<compile_context>
chip_gen: v6e
topology: v6e:2x2x1
jax: 0.10.0
libtpu: 0.0.40
codegen_flags: <defaults>
</compile_context>

<pallas_src>
import functools

import jax
import jax.numpy as jnp
import numpy as np
from jax.experimental import pallas as pl
from jax.experimental.pallas import tpu as pltpu


# ---------------------------------------------------------------------------
# Pallas kernel: grid = (chunk, bs_tile); bs_tile axis accumulates pooling
# ---------------------------------------------------------------------------
def cross_encoder_kernel(
    x_ref,       # [1, T, H]              bf16  embedded tokens (flat tile)
    owner_ref,   # [1, 1, T]              int32 batch id per flat pos, -1 = pad
    yoh_ref,     # [B, L_PAD]             f32   one-hot targets (padded, resident)
    w_enc_ref,   # [H, H]                 bf16
    b_enc_ref,   # [1, H]                 f32
    w1s_ref,     # [H, nh_hid]            bf16  stacked head-1 weights
    b1s_ref,     # [1, nh_hid]            f32
    w2bd_ref,    # [nh_hid, L_PAD]        bf16  block-diagonal head-2, padded N
    b2s_ref,     # [1, L_PAD]             f32
    out_ref,     # out: [1, B, L_PAD]     f32   logits slab (+ loss in lane nh_c)
    acc_ref,     # scratch [B, H]         f32   masked pooled-sum accumulator
    den_ref,     # scratch [B, 1]         f32   valid-token count accumulator
    *, n_heads, C,
):
    t = pl.program_id(1)
    n_t = pl.num_programs(1)
    B, H = acc_ref.shape
    T = x_ref.shape[1]
    L_PAD = out_ref.shape[2]
    nh_c = n_heads * C

    @pl.when(t == 0)
    def _():
        acc_ref[...] = jnp.zeros_like(acc_ref)
        den_ref[...] = jnp.zeros_like(den_ref)

    # --- encoder stand-in on this tile: bf16 MXU GEMM, f32 acc, tanh --------
    x2d = x_ref[0]                                               # [T, H] bf16
    h_bf = jnp.tanh(
        jnp.dot(x2d, w_enc_ref[...], preferred_element_type=jnp.float32)
        + b_enc_ref[...]
    ).astype(jnp.bfloat16)                                       # [T, H] bf16

    # --- block-diagonal masked selector built in-kernel (no B*B*S DMA) ------
    owner_row = owner_ref[0]                                     # [1, T] int32
    b_iota = jax.lax.broadcasted_iota(jnp.int32, (B, T), 0)
    sel = (b_iota == owner_row).astype(jnp.bfloat16)             # [B, T] bf16

    # --- masked-sum pooling as a bf16 MXU GEMM, accumulated across tiles ----
    acc_ref[...] += jnp.dot(sel, h_bf, preferred_element_type=jnp.float32)
    den_ref[...] += jnp.sum(sel.astype(jnp.float32), axis=1, keepdims=True)

    # --- finalize once per chunk: heads + vectorized CE + lane-dense store --
    @pl.when(t == n_t - 1)
    def _():
        inv_denom = 1.0 / jnp.maximum(den_ref[...], 1.0)         # [B, 1] f32
        pooled = acc_ref[...] * inv_denom                        # [B, H] f32

        hid = jnp.maximum(
            jnp.dot(pooled.astype(jnp.bfloat16), w1s_ref[...],
                    preferred_element_type=jnp.float32) + b1s_ref[...],
            0.0,
        )                                                        # [B, nh_hid]
        logits_pad = (
            jnp.dot(hid.astype(jnp.bfloat16), w2bd_ref[...],
                    preferred_element_type=jnp.float32) + b2s_ref[...]
        )                                                        # [B, L_PAD]
        # padding columns (>= nh_c) are exactly 0 (zero weights + zero bias)

        # cross entropy, vectorized across heads on the padded slab ----------
        ci = jax.lax.broadcasted_iota(jnp.int32, (B, L_PAD), 1)  # hoisted once
        ri = jax.lax.broadcasted_iota(jnp.int32, (B, L_PAD), 0)
        picked = jnp.sum(logits_pad * yoh_ref[...], axis=1, keepdims=True)
        NEG = jnp.float32(-1e30)
        sum_lse = jnp.zeros((B, 1), jnp.float32)
        for j in range(n_heads):                                 # tiny static
            in_head = (ci >= j * C) & (ci < (j + 1) * C)
            mx = jnp.max(jnp.where(in_head, logits_pad, NEG),
                         axis=1, keepdims=True)                  # [B, 1]
            se = jnp.sum(jnp.where(in_head, jnp.exp(logits_pad - mx), 0.0),
                         axis=1, keepdims=True)                  # [B, 1]
            sum_lse = sum_lse + mx + jnp.log(se)
        ce_sum = jnp.sum(sum_lse - picked, axis=0, keepdims=True) * (1.0 / B)

        # fold the per-chunk CE scalar into a spare padding lane --------------
        loss_slot = (ri == 0) & (ci == nh_c)
        out_ref[0] = logits_pad + jnp.where(loss_slot, ce_sum, 0.0)


# ---------------------------------------------------------------------------
# Wrapper helpers
# ---------------------------------------------------------------------------
def _round_up(x, m):
    return ((x + m - 1) // m) * m


def _choose_bs_tile(BS, H):
    """Largest 128-multiple divisor of B*S keeping the bf16 x tile <= ~4 MiB."""
    if BS <= 128:
        return BS
    for cand in (2048, 1024, 512, 256, 128):
        if BS % cand == 0 and cand * H * 2 <= (4 << 20):
            return cand
    return BS  # TODO(synk): pad B*S to a 128 multiple for ragged shapes


def _vmem_limit_bytes(T, H, B, nh_hid, L_PAD):
    bf16, f32 = 2, 4
    x_blk = T * H * bf16
    own_blk = T * 4
    out_blk = B * L_PAD * f32
    resident = (H * H * bf16 + H * f32 + H * nh_hid * bf16 + nh_hid * f32
                + nh_hid * L_PAD * bf16 + L_PAD * f32 + B * L_PAD * f32)
    scratch = B * H * f32 + B * 128 * f32
    est = 2 * (x_blk + own_blk + out_blk) + 2 * resident + scratch
    # generous headroom; capped at v7x's 64 MiB per-TC so one setting is safe
    # everywhere (v6e-only deployments could raise this toward 100+ MiB).
    return int(min(max(2 * est + (4 << 20), 16 << 20), 64 << 20))


def pack_params(params, L_PAD):
    """Stack / block-diagonalize head weights (padded lane-dense N) in bf16."""
    n_heads, H, clf_hid = params["w1"].shape
    C = params["w2"].shape[-1]
    nh_hid = n_heads * clf_hid
    nh_c = n_heads * C
    w1s = jnp.transpose(params["w1"], (1, 0, 2)).reshape(H, nh_hid)
    b1s = params["b1"].reshape(1, nh_hid)
    w2bd = jnp.zeros((nh_hid, L_PAD), jnp.float32)
    for j in range(n_heads):
        w2bd = w2bd.at[j * clf_hid:(j + 1) * clf_hid,
                       j * C:(j + 1) * C].set(params["w2"][j])
    b2s = jnp.zeros((1, L_PAD), jnp.float32)
    b2s = b2s.at[:, :nh_c].set(params["b2"].reshape(1, nh_c))
    return {
        "w_enc": params["w_enc"].astype(jnp.bfloat16),
        "b_enc": params["b_enc"].astype(jnp.float32),
        "w1s": w1s.astype(jnp.bfloat16),
        "b1s": b1s.astype(jnp.float32),
        "w2bd": w2bd.astype(jnp.bfloat16),
        "b2s": b2s.astype(jnp.float32),
    }


def _run_all_chunks(x_all, owner_all, yoh_pad, packed, n_heads, C, bs_tile):
    n_chunks, BS, H = x_all.shape
    B, L_PAD = yoh_pad.shape
    nh_hid = packed["b1s"].shape[1]
    n_tiles = BS // bs_tile
    assert n_tiles * bs_tile == BS

    def resident(shape):
        return pl.BlockSpec(shape, lambda c, t: (0, 0))

    kernel = functools.partial(cross_encoder_kernel, n_heads=n_heads, C=C)

    out_all = pl.pallas_call(
        kernel,
        grid=(n_chunks, n_tiles),
        in_specs=[
            pl.BlockSpec((1, bs_tile, H), lambda c, t: (c, t, 0)),   # x tile
            pl.BlockSpec((1, 1, bs_tile), lambda c, t: (c, 0, t)),   # owner tile
            resident((B, L_PAD)),                                    # one-hot y
            resident((H, H)),                                        # w_enc
            resident((1, H)),                                        # b_enc
            resident((H, nh_hid)),                                   # w1 stacked
            resident((1, nh_hid)),                                   # b1 stacked
            resident((nh_hid, L_PAD)),                               # w2 block-diag
            resident((1, L_PAD)),                                    # b2 padded
        ],
        out_specs=pl.BlockSpec((1, B, L_PAD), lambda c, t: (c, 0, 0)),
        out_shape=jax.ShapeDtypeStruct((n_chunks, B, L_PAD), jnp.float32),
        scratch_shapes=[
            pltpu.VMEM((B, H), jnp.float32),      # pooled-sum accumulator
            pltpu.VMEM((B, 1), jnp.float32),      # token-count accumulator
        ],
        compiler_params=pltpu.CompilerParams(
            dimension_semantics=("parallel", "arbitrary"),
            vmem_limit_bytes=_vmem_limit_bytes(bs_tile, H, B, nh_hid, L_PAD),
        ),
    )(x_all, owner_all, yoh_pad, packed["w_enc"], packed["b_enc"],
      packed["w1s"], packed["b1s"], packed["w2bd"], packed["b2s"])
    return out_all


def multiclass_cross_encoder_forward(params, unpacked_data, token_types,
                                     targets, mask_val=0, bs_tile=None):
    """Returns [total_loss, [logits_chunk_i of shape [B, C, n_heads], ...]]."""
    n_chunks = len(unpacked_data)
    n_heads, H, clf_hid = params["w1"].shape
    C = params["w2"].shape[-1]
    nh_c = n_heads * C
    L_PAD = _round_up(nh_c + 1, 128)          # lane-dense slab + 1 loss slot
    y = targets[0].astype(jnp.int32)          # [B, n_heads]
    B = y.shape[0]
    S = unpacked_data[0].shape[1]
    BS = B * S
    if bs_tile is None:
        bs_tile = _choose_bs_tile(BS, H)

    xs, owners = [], []
    batch_ids = jnp.arange(B, dtype=jnp.int32)[:, None]
    for ids, tts in zip(unpacked_data, token_types):
        # glue: embedding gather (stand-in for the pretrained encoder front end)
        # TODO(synk): could move in-kernel via PrefetchScalarGridSpec row gather.
        x = params["tok_emb"][ids] + params["type_emb"][tts]          # [B,S,H]
        xs.append(x.reshape(BS, H).astype(jnp.bfloat16))
        mask = ids != mask_val                                        # [B,S]
        owner = jnp.where(mask, batch_ids, jnp.int32(-1))             # [B,S]
        owners.append(owner.reshape(1, BS))
    x_all = jnp.stack(xs, axis=0)                    # [n_chunks, B*S, H] bf16
    owner_all = jnp.stack(owners, axis=0)            # [n_chunks, 1, B*S] int32

    # chunk-invariant padded one-hot targets (tiny, VMEM-resident)
    yoh = (jax.lax.broadcasted_iota(jnp.int32, (B, n_heads, C), 2)
           == y[:, :, None]).astype(jnp.float32).reshape(B, nh_c)
    yoh_pad = jnp.zeros((B, L_PAD), jnp.float32).at[:, :nh_c].set(yoh)

    packed = pack_params(params, L_PAD)
    out_all = _run_all_chunks(x_all, owner_all, yoh_pad, packed,
                              n_heads, C, bs_tile)

    total_loss = jnp.sum(out_all[:, 0, nh_c]) / float(n_chunks * n_heads)
    per_chunk_logits = [
        out_all[c, :, :nh_c].reshape(B, n_heads, C).transpose(0, 2, 1)
        for c in range(n_chunks)
    ]
    return [total_loss, per_chunk_logits]


# ---------------------------------------------------------------------------
# Pure-JAX reference (same mixed-precision recipe) for validation
# ---------------------------------------------------------------------------
def reference_forward(params, unpacked_data, token_types, targets, mask_val=0):
    n_chunks = len(unpacked_data)
    n_heads = params["w1"].shape[0]
    y = targets[0]
    w_enc_bf = params["w_enc"].astype(jnp.bfloat16)
    total_loss = 0.0
    per_chunk = []
    for ids, tts in zip(unpacked_data, token_types):
        x = (params["tok_emb"][ids] + params["type_emb"][tts]).astype(jnp.bfloat16)
        mask = ids != mask_val
        h_seq = jnp.tanh(
            jnp.einsum("bsh,hk->bsk", x, w_enc_bf,
                       preferred_element_type=jnp.float32) + params["b_enc"])
        denom = jnp.maximum(jnp.sum(mask.astype(jnp.float32), axis=1,
                                    keepdims=True), 1.0)
        pooled = jnp.einsum("bs,bsh->bh", mask.astype(jnp.bfloat16),
                            h_seq.astype(jnp.bfloat16),
                            preferred_element_type=jnp.float32) / denom
        hb = pooled.astype(jnp.bfloat16)
        head_logits = []
        for j in range(n_heads):
            hid = jnp.maximum(
                jnp.dot(hb, params["w1"][j].astype(jnp.bfloat16),
                        preferred_element_type=jnp.float32) + params["b1"][j],
                0.0)
            logits = (jnp.dot(hid.astype(jnp.bfloat16),
                              params["w2"][j].astype(jnp.bfloat16),
                              preferred_element_type=jnp.float32)
                      + params["b2"][j])
            head_logits.append(logits)
            logp = jax.nn.log_softmax(logits, axis=-1)
            picked = jnp.take_along_axis(logp, y[:, j][:, None], axis=-1)[:, 0]
            total_loss = total_loss + (-jnp.mean(picked)) / n_chunks / n_heads
        per_chunk.append(jnp.stack(head_logits, axis=-1))
    return [total_loss, per_chunk]


# ---------------------------------------------------------------------------
if __name__ == "__main__":
    # small shapes consistent with the module's forward; chosen so the B*S
    # tiling axis actually has 2 tiles (BS = 256, bs_tile = 128).
    B, S, H = 4, 64, 128        # batch, seq, encoder hidden size
    vocab, n_types = 100, 2
    n_heads, C = 3, 4           # y_dim = (3, 4)
    clf_hid = 32                # clf_hid_dim
    n_chunks = 2
    mask_val = 0

    key = jax.random.PRNGKey(0)
    ks = jax.random.split(key, 12)

    params = {
        "tok_emb":  0.02 * jax.random.normal(ks[0], (vocab, H), jnp.float32),
        "type_emb": 0.02 * jax.random.normal(ks[1], (n_types, H), jnp.float32),
        "w_enc":    0.1 * jax.random.normal(ks[2], (H, H), jnp.float32),
        "b_enc":    0.01 * jax.random.normal(ks[3], (1, H), jnp.float32),
        "w1":       0.1 * jax.random.normal(ks[4], (n_heads, H, clf_hid), jnp.float32),
        "b1":       0.01 * jax.random.normal(ks[5], (n_heads, clf_hid), jnp.float32),
        "w2":       0.1 * jax.random.normal(ks[6], (n_heads, clf_hid, C), jnp.float32),
        "b2":       0.01 * jax.random.normal(ks[7], (n_heads, C), jnp.float32),
    }

    # inputs: two "chunks" of (ids, token_types), with some padding (== mask_val)
    unpacked_data, token_types = [], []
    for c in range(n_chunks):
        ids = jax.random.randint(ks[8 + c], (B, S), 1, vocab, dtype=jnp.int32)
        ids = ids.at[0, -6:].set(mask_val)           # pad tail of example 0
        ids = ids.at[2, -3:].set(mask_val)           # pad tail of example 2
        tts = jax.random.randint(ks[10 + c], (B, S), 0, n_types, dtype=jnp.int32)
        unpacked_data.append(ids)
        token_types.append(tts)
    y = jax.random.randint(jax.random.PRNGKey(42), (B, n_heads), 0, C,
                           dtype=jnp.int32)
    targets = (y,)

    loss, logits_list = multiclass_cross_encoder_forward(
        params, unpacked_data, token_types, targets,
        mask_val=mask_val, bs_tile=128)
    jax.block_until_ready((loss, logits_list))

    ref_loss, ref_logits = reference_forward(
        params, unpacked_data, token_types, targets, mask_val=mask_val)

    np.testing.assert_allclose(np.asarray(loss), np.asarray(ref_loss),
                               rtol=1e-2, atol=1e-3)
    for a, b in zip(logits_list, ref_logits):
        assert a.shape == (B, C, n_heads)
        np.testing.assert_allclose(np.asarray(a), np.asarray(b),
                                   rtol=2e-2, atol=2e-3)

    print("KERNEL_OK")
</pallas_src>

<mosaic_0001>
module attributes {stable_mosaic.version = 11 : i64} {
  func.func @cross_encoder_kernel(%arg0: i32, %arg1: i32, %arg2: memref<1x128x128xbf16, #tpu.memory_space<vmem>>, %arg3: memref<1x1x128xi32, #tpu.memory_space<vmem>>, %arg4: memref<4x128xf32, #tpu.memory_space<vmem>>, %arg5: memref<128x128xbf16, #tpu.memory_space<vmem>>, %arg6: memref<1x128xf32, #tpu.memory_space<vmem>>, %arg7: memref<128x96xbf16, #tpu.memory_space<vmem>>, %arg8: memref<1x96xf32, #tpu.memory_space<vmem>>, %arg9: memref<96x128xbf16, #tpu.memory_space<vmem>>, %arg10: memref<1x128xf32, #tpu.memory_space<vmem>>, %arg11: memref<1x4x128xf32, #tpu.memory_space<vmem>>, %arg12: memref<4x128xf32, #tpu.memory_space<vmem>>, %arg13: memref<4x1xf32, #tpu.memory_space<vmem>>) attributes {dimension_semantics = [#tpu.dimension_semantics<parallel>, #tpu.dimension_semantics<arbitrary>], iteration_bounds = array<i64: 2, 2>, scalar_prefetch = 0 : i64, scratch_operands = 2 : i64, tpu.core_type = #tpu.core_type<tc>, window_params = [{transform_indices = @transform_0, window_bounds = array<i64: 1, 128, 128>}, {transform_indices = @transform_1, window_bounds = array<i64: 1, 1, 128>}, {pipeline_mode = #tpu.pipeline_mode<synchronous>, transform_indices = @transform_2, window_bounds = array<i64: 4, 128>}, {pipeline_mode = #tpu.pipeline_mode<synchronous>, transform_indices = @transform_3, window_bounds = array<i64: 128, 128>}, {pipeline_mode = #tpu.pipeline_mode<synchronous>, transform_indices = @transform_4, window_bounds = array<i64: 1, 128>}, {pipeline_mode = #tpu.pipeline_mode<synchronous>, transform_indices = @transform_5, window_bounds = array<i64: 128, 96>}, {pipeline_mode = #tpu.pipeline_mode<synchronous>, transform_indices = @transform_6, window_bounds = array<i64: 1, 96>}, {pipeline_mode = #tpu.pipeline_mode<synchronous>, transform_indices = @transform_7, window_bounds = array<i64: 96, 128>}, {pipeline_mode = #tpu.pipeline_mode<synchronous>, transform_indices = @transform_8, window_bounds = array<i64: 1, 128>}, {transform_indices = @transform_9, window_bounds = array<i64: 1, 4, 128>}]} {
    %c0_i32 = arith.constant 0 : i32
    %0 = arith.cmpi eq, %arg1, %c0_i32 : i32
    %1 = arith.extui %0 : i1 to i32
    %c0_i32_0 = arith.constant 0 : i32
    %2 = arith.cmpi ne, %1, %c0_i32_0 : i32
    scf.if %2 {
      %cst_21 = arith.constant 0.000000e+00 : f32
      %33 = vector.broadcast %cst_21 : f32 to vector<4x128xf32>
      %c0_22 = arith.constant 0 : index
      %c0_23 = arith.constant 0 : index
      %34 = vector.load %arg12[%c0_22, %c0_23] : memref<4x128xf32, #tpu.memory_space<vmem>>, vector<4x128xf32>
      tpu.vector_store %arg12[%c0_22, %c0_23], %33 {strides = array<i32>} : memref<4x128xf32, #tpu.memory_space<vmem>>, vector<4x128xf32>,
      %cst_24 = arith.constant 0.000000e+00 : f32
      %35 = vector.broadcast %cst_24 : f32 to vector<4x1xf32>
      %c0_25 = arith.constant 0 : index
      %c0_26 = arith.constant 0 : index
      %36 = vector.load %arg13[%c0_25, %c0_26] : memref<4x1xf32, #tpu.memory_space<vmem>>, vector<4x1xf32>
      tpu.vector_store %arg13[%c0_25, %c0_26], %35 {strides = array<i32>} : memref<4x1xf32, #tpu.memory_space<vmem>>, vector<4x1xf32>,
    } else {
    }
    %c0 = arith.constant 0 : index
    %c0_1 = arith.constant 0 : index
    %c0_2 = arith.constant 0 : index
    %3 = vector.load %arg2[%c0, %c0_1, %c0_2] : memref<1x128x128xbf16, #tpu.memory_space<vmem>>, vector<1x128x128xbf16>
    %4 = vector.shape_cast %3 : vector<1x128x128xbf16> to vector<128x128xbf16>
    %c0_3 = arith.constant 0 : index
    %c0_4 = arith.constant 0 : index
    %5 = vector.load %arg5[%c0_3, %c0_4] : memref<128x128xbf16, #tpu.memory_space<vmem>>, vector<128x128xbf16>
    %cst = arith.constant dense<0.000000e+00> : vector<128x128xf32>
    %6 = tpu.matmul %4, %5, %cst {dimension_numbers = #tpu.dot_dimension_numbers<[1], [0], [0], [1], [0, 0, 1, 1], [], []>} : vector<128x128xbf16>, vector<128x128xbf16>, vector<128x128xf32> -> vector<128x128xf32>
    %c0_5 = arith.constant 0 : index
    %c0_6 = arith.constant 0 : index
    %7 = vector.load %arg6[%c0_5, %c0_6] : memref<1x128xf32, #tpu.memory_space<vmem>>, vector<1x128xf32>
    %8 = vector.broadcast %7 : vector<1x128xf32> to vector<128x128xf32>
    %9 = arith.addf %6, %8 : vector<128x128xf32>
    %10 = math.tanh %9 : vector<128x128xf32>
    %11 = arith.truncf %10 : vector<128x128xf32> to vector<128x128xbf16>
    %c0_7 = arith.constant 0 : index
    %c0_8 = arith.constant 0 : index
    %c0_9 = arith.constant 0 : index
    %12 = vector.load %arg3[%c0_7, %c0_8, %c0_9] : memref<1x1x128xi32, #tpu.memory_space<vmem>>, vector<1x1x128xi32>
    %13 = vector.shape_cast %12 : vector<1x1x128xi32> to vector<1x128xi32>
    %14 = tpu.iota {dimensions = array<i32: 0>} : vector<4x128xi32>
    %15 = vector.broadcast %13 : vector<1x128xi32> to vector<4x128xi32>
    %16 = arith.cmpi eq, %14, %15 : vector<4x128xi32>
    %17 = arith.extui %16 : vector<4x128xi1> to vector<4x128xi32>
    %18 = arith.sitofp %17 : vector<4x128xi32> to vector<4x128xf32>
    %19 = arith.truncf %18 : vector<4x128xf32> to vector<4x128xbf16>
    %c0_10 = arith.constant 0 : index
    %c0_11 = arith.constant 0 : index
    %20 = vector.load %arg12[%c0_10, %c0_11] : memref<4x128xf32, #tpu.memory_space<vmem>>, vector<4x128xf32>
    %cst_12 = arith.constant dense<0.000000e+00> : vector<4x128xf32>
    %21 = tpu.matmul %19, %11, %cst_12 {dimension_numbers = #tpu.dot_dimension_numbers<[1], [0], [0], [1], [0, 0, 1, 1], [], []>} : vector<4x128xbf16>, vector<128x128xbf16>, vector<4x128xf32> -> vector<4x128xf32>
    %22 = arith.addf %20, %21 : vector<4x128xf32>
    %c0_13 = arith.constant 0 : index
    %c0_14 = arith.constant 0 : index
    %23 = vector.load %arg12[%c0_13, %c0_14] : memref<4x128xf32, #tpu.memory_space<vmem>>, vector<4x128xf32>
    tpu.vector_store %arg12[%c0_13, %c0_14], %22 {strides = array<i32>} : memref<4x128xf32, #tpu.memory_space<vmem>>, vector<4x128xf32>,
    %c0_15 = arith.constant 0 : index
    %c0_16 = arith.constant 0 : index
    %24 = vector.load %arg13[%c0_15, %c0_16] : memref<4x1xf32, #tpu.memory_space<vmem>>, vector<4x1xf32>
    %25 = arith.extf %19 : vector<4x128xbf16> to vector<4x128xf32>
    %cst_17 = arith.constant dense<0.000000e+00> : vector<4xf32>
    %26 = vector.multi_reduction <add>, %25, %cst_17 [1] : vector<4x128xf32> to vector<4xf32>
    %27 = vector.shape_cast %26 : vector<4xf32> to vector<4x1xf32>
    %28 = arith.addf %24, %27 : vector<4x1xf32>
    %c0_18 = arith.constant 0 : index
    %c0_19 = arith.constant 0 : index
    %29 = vector.load %arg13[%c0_18, %c0_19] : memref<4x1xf32, #tpu.memory_space<vmem>>, vector<4x1xf32>
    tpu.vector_store %arg13[%c0_18, %c0_19], %28 {strides = array<i32>} : memref<4x1xf32, #tpu.memory_space<vmem>>, vector<4x1xf32>,
    %c1_i32 = arith.constant 1 : i32
    %30 = arith.cmpi eq, %arg1, %c1_i32 : i32
    %31 = arith.extui %30 : i1 to i32
    %c0_i32_20 = arith.constant 0 : i32
    %32 = arith.cmpi ne, %31, %c0_i32_20 : i32
    scf.if %32 {
      %c0_21 = arith.constant 0 : index
      %c0_22 = arith.constant 0 : index
      %33 = vector.load %arg13[%c0_21, %c0_22] : memref<4x1xf32, #tpu.memory_space<vmem>>, vector<4x1xf32>
      %cst_23 = arith.constant 1.000000e+00 : f32
      %34 = vector.broadcast %cst_23 : f32 to vector<4x1xf32>
      %35 = arith.maximumf %33, %34 : vector<4x1xf32>
      %cst_24 = arith.constant 1.000000e+00 : f32
      %36 = vector.broadcast %cst_24 : f32 to vector<4x1xf32>
      %37 = arith.divf %36, %35 : vector<4x1xf32>
      %c0_25 = arith.constant 0 : index
      %c0_26 = arith.constant 0 : index
      %38 = vector.load %arg12[%c0_25, %c0_26] : memref<4x128xf32, #tpu.memory_space<vmem>>, vector<4x128xf32>
      %39 = vector.broadcast %37 : vector<4x1xf32> to vector<4x128xf32>
      %40 = arith.mulf %38, %39 : vector<4x128xf32>
      %41 = arith.truncf %40 : vector<4x128xf32> to vector<4x128xbf16>
      %c0_27 = arith.constant 0 : index
      %c0_28 = arith.constant 0 : index
      %42 = vector.load %arg7[%c0_27, %c0_28] : memref<128x96xbf16, #tpu.memory_space<vmem>>, vector<128x96xbf16>
      %cst_29 = arith.constant dense<0.000000e+00> : vector<4x96xf32>
      %43 = tpu.matmul %41, %42, %cst_29 {dimension_numbers = #tpu.dot_dimension_numbers<[1], [0], [0], [1], [0, 0, 1, 1], [], []>} : vector<4x128xbf16>, vector<128x96xbf16>, vector<4x96xf32> -> vector<4x96xf32>
      %c0_30 = arith.constant 0 : index
      %c0_31 = arith.constant 0 : index
      %44 = vector.load %arg8[%c0_30, %c0_31] : memref<1x96xf32, #tpu.memory_space<vmem>>, vector<1x96xf32>
      %45 = vector.broadcast %44 : vector<1x96xf32> to vector<4x96xf32>
      %46 = arith.addf %43, %45 : vector<4x96xf32>
      %cst_32 = arith.constant 0.000000e+00 : f32
      %47 = vector.broadcast %cst_32 : f32 to vector<4x96xf32>
      %48 = arith.maximumf %46, %47 : vector<4x96xf32>
      %49 = arith.truncf %48 : vector<4x96xf32> to vector<4x96xbf16>
      %c0_33 = arith.constant 0 : index
      %c0_34 = arith.constant 0 : index
      %50 = vector.load %arg9[%c0_33, %c0_34] : memref<96x128xbf16, #tpu.memory_space<vmem>>, vector<96x128xbf16>
      %cst_35 = arith.constant dense<0.000000e+00> : vector<4x128xf32>
      %51 = tpu.matmul %49, %50, %cst_35 {dimension_numbers = #tpu.dot_dimension_numbers<[1], [0], [0], [1], [0, 0, 1, 1], [], []>} : vector<4x96xbf16>, vector<96x128xbf16>, vector<4x128xf32> -> vector<4x128xf32>
      %c0_36 = arith.constant 0 : index
      %c0_37 = arith.constant 0 : index
      %52 = vector.load %arg10[%c0_36, %c0_37] : memref<1x128xf32, #tpu.memory_space<vmem>>, vector<1x128xf32>
      %53 = vector.broadcast %52 : vector<1x128xf32> to vector<4x128xf32>
      %54 = arith.addf %51, %53 : vector<4x128xf32>
      %55 = tpu.iota {dimensions = array<i32: 1>} : vector<4x128xi32>
      %56 = tpu.iota {dimensions = array<i32: 0>} : vector<4x128xi32>
      %c0_38 = arith.constant 0 : index
      %c0_39 = arith.constant 0 : index
      %57 = vector.load %arg4[%c0_38, %c0_39] : memref<4x128xf32, #tpu.memory_space<vmem>>, vector<4x128xf32>
      %58 = arith.mulf %54, %57 : vector<4x128xf32>
      %cst_40 = arith.constant dense<0.000000e+00> : vector<4xf32>
      %59 = vector.multi_reduction <add>, %58, %cst_40 [1] : vector<4x128xf32> to vector<4xf32>
      %60 = vector.shape_cast %59 : vector<4xf32> to vector<4x1xf32>
      %cst_41 = arith.constant 0.000000e+00 : f32
      %61 = vector.broadcast %cst_41 : f32 to vector<4x1xf32>
      %c0_i32_42 = arith.constant 0 : i32
      %62 = vector.broadcast %c0_i32_42 : i32 to vector<4x128xi32>
      %63 = arith.cmpi sge, %55, %62 : vector<4x128xi32>
      %c4_i32 = arith.constant 4 : i32
      %64 = vector.broadcast %c4_i32 : i32 to vector<4x128xi32>
      %65 = arith.cmpi slt, %55, %64 : vector<4x128xi32>
      %66 = arith.andi %63, %65 : vector<4x128xi1>
      %cst_43 = arith.constant -1.000000e+30 : f32
      %67 = vector.broadcast %cst_43 : f32 to vector<4x128xf32>
      %68 = arith.select %66, %54, %67 : vector<4x128xi1>, vector<4x128xf32>
      %cst_44 = arith.constant dense<0xFF800000> : vector<4xf32>
      %69 = vector.multi_reduction <maximumf>, %68, %cst_44 [1] : vector<4x128xf32> to vector<4xf32>
      %70 = vector.shape_cast %69 : vector<4xf32> to vector<4x1xf32>
      %71 = vector.broadcast %70 : vector<4x1xf32> to vector<4x128xf32>
      %72 = arith.subf %54, %71 : vector<4x128xf32>
      %73 = math.exp %72 : vector<4x128xf32>
      %cst_45 = arith.constant 0.000000e+00 : f32
      %74 = vector.broadcast %cst_45 : f32 to vector<4x128xf32>
      %75 = arith.select %66, %73, %74 : vector<4x128xi1>, vector<4x128xf32>
      %cst_46 = arith.constant dense<0.000000e+00> : vector<4xf32>
      %76 = vector.multi_reduction <add>, %75, %cst_46 [1] : vector<4x128xf32> to vector<4xf32>
      %77 = vector.shape_cast %76 : vector<4xf32> to vector<4x1xf32>
      %78 = arith.addf %61, %70 : vector<4x1xf32>
      %79 = math.log %77 : vector<4x1xf32>
      %80 = arith.addf %78, %79 : vector<4x1xf32>
      %c4_i32_47 = arith.constant 4 : i32
      %81 = vector.broadcast %c4_i32_47 : i32 to vector<4x128xi32>
      %82 = arith.cmpi sge, %55, %81 : vector<4x128xi32>
      %c8_i32 = arith.constant 8 : i32
      %83 = vector.broadcast %c8_i32 : i32 to vector<4x128xi32>
      %84 = arith.cmpi slt, %55, %83 : vector<4x128xi32>
      %85 = arith.andi %82, %84 : vector<4x128xi1>
      %cst_48 = arith.constant -1.000000e+30 : f32
      %86 = vector.broadcast %cst_48 : f32 to vector<4x128xf32>
      %87 = arith.select %85, %54, %86 : vector<4x128xi1>, vector<4x128xf32>
      %cst_49 = arith.constant dense<0xFF800000> : vector<4xf32>
      %88 = vector.multi_reduction <maximumf>, %87, %cst_49 [1] : vector<4x128xf32> to vector<4xf32>
      %89 = vector.shape_cast %88 : vector<4xf32> to vector<4x1xf32>
      %90 = vector.broadcast %89 : vector<4x1xf32> to vector<4x128xf32>
      %91 = arith.subf %54, %90 : vector<4x128xf32>
      %92 = math.exp %91 : vector<4x128xf32>
      %cst_50 = arith.constant 0.000000e+00 : f32
      %93 = vector.broadcast %cst_50 : f32 to vector<4x128xf32>
      %94 = arith.select %85, %92, %93 : vector<4x128xi1>, vector<4x128xf32>
      %cst_51 = arith.constant dense<0.000000e+00> : vector<4xf32>
      %95 = vector.multi_reduction <add>, %94, %cst_51 [1] : vector<4x128xf32> to vector<4xf32>
      %96 = vector.shape_cast %95 : vector<4xf32> to vector<4x1xf32>
      %97 = arith.addf %80, %89 : vector<4x1xf32>
      %98 = math.log %96 : vector<4x1xf32>
      %99 = arith.addf %97, %98 : vector<4x1xf32>
      %c8_i32_52 = arith.constant 8 : i32
      %100 = vector.broadcast %c8_i32_52 : i32 to vector<4x128xi32>
      %101 = arith.cmpi sge, %55, %100 : vector<4x128xi32>
      %c12_i32 = arith.constant 12 : i32
      %102 = vector.broadcast %c12_i32 : i32 to vector<4x128xi32>
      %103 = arith.cmpi slt, %55, %102 : vector<4x128xi32>
      %104 = arith.andi %101, %103 : vector<4x128xi1>
      %cst_53 = arith.constant -1.000000e+30 : f32
      %105 = vector.broadcast %cst_53 : f32 to vector<4x128xf32>
      %106 = arith.select %104, %54, %105 : vector<4x128xi1>, vector<4x128xf32>
      %cst_54 = arith.constant dense<0xFF800000> : vector<4xf32>
      %107 = vector.multi_reduction <maximumf>, %106, %cst_54 [1] : vector<4x128xf32> to vector<4xf32>
      %108 = vector.shape_cast %107 : vector<4xf32> to vector<4x1xf32>
      %109 = vector.broadcast %108 : vector<4x1xf32> to vector<4x128xf32>
      %110 = arith.subf %54, %109 : vector<4x128xf32>
      %111 = math.exp %110 : vector<4x128xf32>
      %cst_55 = arith.constant 0.000000e+00 : f32
      %112 = vector.broadcast %cst_55 : f32 to vector<4x128xf32>
      %113 = arith.select %104, %111, %112 : vector<4x128xi1>, vector<4x128xf32>
      %cst_56 = arith.constant dense<0.000000e+00> : vector<4xf32>
      %114 = vector.multi_reduction <add>, %113, %cst_56 [1] : vector<4x128xf32> to vector<4xf32>
      %115 = vector.shape_cast %114 : vector<4xf32> to vector<4x1xf32>
      %116 = arith.addf %99, %108 : vector<4x1xf32>
      %117 = math.log %115 : vector<4x1xf32>
      %118 = arith.addf %116, %117 : vector<4x1xf32>
      %119 = arith.subf %118, %60 : vector<4x1xf32>
      %cst_57 = arith.constant dense<0.000000e+00> : vector<1xf32>
      %120 = vector.multi_reduction <add>, %119, %cst_57 [0] : vector<4x1xf32> to vector<1xf32>
      %121 = vector.shape_cast %120 : vector<1xf32> to vector<1x1xf32>
      %cst_58 = arith.constant 2.500000e-01 : f32
      %122 = vector.broadcast %cst_58 : f32 to vector<1x1xf32>
      %123 = arith.mulf %121, %122 : vector<1x1xf32>
      %c0_i32_59 = arith.constant 0 : i32
      %124 = vector.broadcast %c0_i32_59 : i32 to vector<4x128xi32>
      %125 = arith.cmpi eq, %56, %124 : vector<4x128xi32>
      %c12_i32_60 = arith.constant 12 : i32
      %126 = vector.broadcast %c12_i32_60 : i32 to vector<4x128xi32>
      %127 = arith.cmpi eq, %55, %126 : vector<4x128xi32>
      %128 = arith.andi %125, %127 : vector<4x128xi1>
      %cst_61 = arith.constant 0.000000e+00 : f32
      %129 = vector.shape_cast %123 : vector<1x1xf32> to vector<1x1xf32>
      %130 = vector.broadcast %129 : vector<1x1xf32> to vector<4x128xf32>
      %131 = vector.broadcast %cst_61 : f32 to vector<4x128xf32>
      %132 = arith.select %128, %130, %131 : vector<4x128xi1>, vector<4x128xf32>
      %133 = arith.addf %54, %132 : vector<4x128xf32>
      %c0_62 = arith.constant 0 : index
      %c0_63 = arith.constant 0 : index
      %c0_64 = arith.constant 0 : index
      %134 = vector.load %arg11[%c0_62, %c0_63, %c0_64] : memref<1x4x128xf32, #tpu.memory_space<vmem>>, vector<1x4x128xf32>
      %135 = vector.shape_cast %134 : vector<1x4x128xf32> to vector<4x128xf32>
      %136 = vector.shape_cast %133 : vector<4x128xf32> to vector<1x4x128xf32>
      tpu.vector_store %arg11[%c0_62, %c0_63, %c0_64], %136 {strides = array<i32>} : memref<1x4x128xf32, #tpu.memory_space<vmem>>, vector<1x4x128xf32>,
    } else {
    }
    return
  }
  func.func @transform_0(%arg0: i32, %arg1: i32) -> (i32, i32, i32) {
    %c0_i32 = arith.constant 0 : i32
    %c0_i32_0 = arith.constant 0 : i32
    return %arg0, %arg1, %c0_i32 : i32, i32, i32
  }
  func.func @transform_1(%arg0: i32, %arg1: i32) -> (i32, i32, i32) {
    %c0_i32 = arith.constant 0 : i32
    %c0_i32_0 = arith.constant 0 : i32
    return %arg0, %c0_i32, %arg1 : i32, i32, i32
  }
  func.func @transform_2(%arg0: i32, %arg1: i32) -> (i32, i32) {
    %c0_i32 = arith.constant 0 : i32
    %c0_i32_0 = arith.constant 0 : i32
    %c0_i32_1 = arith.constant 0 : i32
    return %c0_i32, %c0_i32_0 : i32, i32
  }
  func.func @transform_3(%arg0: i32, %arg1: i32) -> (i32, i32) {
    %c0_i32 = arith.constant 0 : i32
    %c0_i32_0 = arith.constant 0 : i32
    %c0_i32_1 = arith.constant 0 : i32
    return %c0_i32, %c0_i32_0 : i32, i32
  }
  func.func @transform_4(%arg0: i32, %arg1: i32) -> (i32, i32) {
    %c0_i32 = arith.constant 0 : i32
    %c0_i32_0 = arith.constant 0 : i32
    %c0_i32_1 = arith.constant 0 : i32
    return %c0_i32, %c0_i32_0 : i32, i32
  }
  func.func @transform_5(%arg0: i32, %arg1: i32) -> (i32, i32) {
    %c0_i32 = arith.constant 0 : i32
    %c0_i32_0 = arith.constant 0 : i32
    %c0_i32_1 = arith.constant 0 : i32
    return %c0_i32, %c0_i32_0 : i32, i32
  }
  func.func @transform_6(%arg0: i32, %arg1: i32) -> (i32, i32) {
    %c0_i32 = arith.constant 0 : i32
    %c0_i32_0 = arith.constant 0 : i32
    %c0_i32_1 = arith.constant 0 : i32
    return %c0_i32, %c0_i32_0 : i32, i32
  }
  func.func @transform_7(%arg0: i32, %arg1: i32) -> (i32, i32) {
    %c0_i32 = arith.constant 0 : i32
    %c0_i32_0 = arith.constant 0 : i32
    %c0_i32_1 = arith.constant 0 : i32
    return %c0_i32, %c0_i32_0 : i32, i32
  }
  func.func @transform_8(%arg0: i32, %arg1: i32) -> (i32, i32) {
    %c0_i32 = arith.constant 0 : i32
    %c0_i32_0 = arith.constant 0 : i32
    %c0_i32_1 = arith.constant 0 : i32
    return %c0_i32, %c0_i32_0 : i32, i32
  }
  func.func @transform_9(%arg0: i32, %arg1: i32) -> (i32, i32, i32) {
    %c0_i32 = arith.constant 0 : i32
    %c0_i32_0 = arith.constant 0 : i32
    %c0_i32_1 = arith.constant 0 : i32
    return %arg0, %c0_i32, %c0_i32_0 : i32, i32, i32
  }
}

</mosaic_0001>

<bundles_post_ra>
// kernel: tpu_custom_call.1
= control target key start
LH: loop header
LB: loop body
LE: loop exit
PB: predicated region body
PF: predicated region fallthrough
CT: control target
= control target key end

     0   :  { %s2186_s0 = inlined_call_operand.hbm [shape: bf16[2,256,128], index: 0, kind: input, shape index: {}]   ;;  %s2187_s1 = inlined_call_operand.vmem [shape: s32[2,1,256], index: 1, kind: input, shape index: {}]   ;;  %s2188_s2 = inlined_call_operand.hbm [shape: f32[4,128], index: 2, kind: input, shape index: {}]   ;;  %s2189_s3 = inlined_call_operand.vmem [shape: bf16[128,128], index: 3, kind: input, shape index: {}]   ;;  %s2190_s4 = inlined_call_operand.vmem [shape: f32[1,128], index: 4, kind: input, shape index: {}]   ;;  %s2191_s5 = inlined_call_operand.vmem [shape: bf16[128,96], index: 5, kind: input, shape index: {}]   ;;  %s2192_s6 = inlined_call_operand.vmem [shape: f32[1,96], index: 6, kind: input, shape index: {}]   ;;  %s2193_s7 = inlined_call_operand.vmem [shape: bf16[96,128], index: 7, kind: input, shape index: {}]   ;;  %s2194_s8 = inlined_call_operand.vmem [shape: f32[1,128], index: 8, kind: input, shape index: {}]   ;;  %s2195_s9 = inlined_call_operand.hbm [shape: f32[2,4,128], index: 9, kind: output, shape index: {}]  }
   0x1   :  { %2210 = sst [smem:[#allocation19_spill]] %s2188_s2 }
   0x2   :  { %2211 = sst [smem:[#allocation20_spill]] %s2190_s4 }
   0x3   :  { %2212 = sst [smem:[#allocation21_spill]] %s2191_s5 }
   0x4   :  { %2213 = sst [smem:[#allocation22_spill]] %s2192_s6 }
   0x5   :  { %2214 = sst [smem:[#allocation23_spill]] %s2193_s7 }
   0x6   :  { %2215 = sst [smem:[#allocation24_spill]] %s2194_s8 }
   0x7   :  { %2216 = sst [smem:[#allocation25_spill]] %s2195_s9 }
   0x8   :  { %14 = vsyncpa [#allocation5], 0 }
   0x9   :  { %16 = vsyncpa [#allocation5 + $0x1], 0 }
   0xa   :  { %17 = vsyncpa [#allocation8], 0 }
   0xb   :  { %18 = vsyncpa [#allocation6], 0 }
   0xc   :  { %20 = vsyncpa [#allocation6 + $0x1], 0  ;;  %s1791_s30 = smov 0   ;;  %s1793_s10 = smov 0  }
   0xd   :  { %s1795_s11 = smov 0   ;;  %s1797_s12 = smov 0  }
   0xe   :  { %s1799_s13 = smov 0   ;;  %s1801_s14 = smov 0  }
   0xf   :  { %s1803_s15 = smov 0   ;;  %s1805_s16 = smov 0  }
  0x10   :  { %s1807_s17 = smov 0   ;;  %s1809_s18 = smov 0  }
  0x11   :  { %s1811_s19 = smov 0  }
  0x12 LB: > { %2217 = sst [smem:[#allocation13_spill]] %s1687_s30  ;;  %s1163_s20 = sadd.s32 4294967295, %s1727_s19   ;;  %s1727_s19 = sphi %s1811_s19, %s26_s19   ;;  %s1723_s18 = sphi %s1809_s18, %s2261_s18   ;;  %s1719_s17 = sphi %s1807_s17, %s2253_s17   ;;  %s1715_s16 = sphi %s1805_s16, %s2260_s16   ;;  %s1711_s15 = sphi %s1803_s15, %s2252_s15   ;;  %s1707_s14 = sphi %s1801_s14, %s2259_s14   ;;  %s1703_s13 = sphi %s1799_s13, %s2258_s13   ;;  %s1699_s12 = sphi %s1797_s12, %s2257_s12   ;;  %s1695_s11 = sphi %s1795_s11, %s2256_s11   ;;  %s1691_s10 = sphi %s1793_s10, %s2255_s10   ;;  %s1687_s30 = sphi %s1791_s30, %s2254_s30  }
  0x13   : > { %2218 = sst [smem:[#allocation14_spill]] %s1719_s17  ;;  %s1164_s21 = sadd.s32 4294967294, %s1727_s19  }
  0x14   : > { %2219 = sst [smem:[#allocation15_spill]] %s1727_s19  ;;  %p54_p0 = scmp.ne.s32.totalorder %s1707_s14, %s1703_s13 }
  0x15   : > { %p55_p1 = scmp.eq.s32.totalorder %s1727_s19, 0  ;;  %p60_p2 = scmp.ne.s32.totalorder %s1703_s13, %s1699_s12 }
  0x16   : > { %p1851_p3 = scmp.eq.s32.totalorder %s1163_s20, 0  ;;  %p258_p5 = scmp.ne.s32.totalorder %s1695_s11, %s1691_s10 }
  0x17   : > { %p1856_p4 = por %p55_p1, %p54_p0  ;;  %p259_p7 = scmp.eq.s32.totalorder %s1163_s20, 3 }
  0x18   : > { %p1864_p6 = por %p1851_p3, %p60_p2  ;;  %p264_p8 = scmp.ne.s32.totalorder %s1691_s10, %s1687_s30 }
  0x19   : > { %p265_p9 = scmp.eq.s32.totalorder %s1164_s21, 3  ;;  %p1870_p10 = por %p259_p7, %p258_p5 }
  0x1a   : > { %s2222_s26 = scalar_select %p1864_p6, 1, 0 }
  0x1b   : > { %s2223_s27 = scalar_select %p1870_p10, 1, 0 }
  0x1c   : > { %p1165_p11 = scmp.ge.s32.totalorder %s1727_s19, 1  ;;  %p1875_p12 = por %p265_p9, %p264_p8 }
  0x1d   : > { %2224 = sst [smem:[#allocation16_spill]] %s2223_s27  ;;  %p272_p13 = scmp.lt.s32.totalorder %s1727_s19, 5 }
  0x1e   : > { %s2225_s28 = scalar_select %p1875_p12, 1, 0 }
  0x1f   : > { %p1880_p0 = pnand %p1165_p11, %p272_p13  ;;  %s1729_s12 = smov [#allocation7]  }
  0x20   : > { %2226 = sst [smem:[#allocation17_spill]] %s2225_s28  ;;  %s285_s22 = sshll.u32 %s1729_s12, 4  ;;  %s286_s22 = int_to_ptr.vmem [resolvable:$true] %s285_s22 }
  0x21   : > { %s2227_s29 = scalar_select %p1880_p0, 1, 0 }
  0x22   : > { %p1358_p1 = pneg %p1880_p0  ;;  %p1371_p2 = scmp.lt.s32.totalorder %s1727_s19, 4 }
  0x23   : > { %s1560_s21 = scalar_lea.vmem %s286_s22, 64  ;;  %p1568_p12 = scmp.lt.s32.totalorder %s286_s22, %s286_s22 }
  0x24   : > { %p1359_p5 = pnand %p1358_p1, %p1851_p3  ;;  %p1891_p7 = pnand %p1371_p2, %p1856_p4 }
  0x25   : > { %p1561_p9 = scmp.ne.s32.totalorder %s286_s22, %s1560_s21  ;;  %p1569_p10 = scmp.lt.s32.totalorder %s1560_s21, %s1560_s21 }
  0x26   : > { %p1551_p8 = pneg %p1359_p5 }
  0x27   : > { %p1570_p6 = por %p1569_p10, %p1568_p12 }
  0x28   : > { %p1563_p11 = pnand %p1561_p9, %p1551_p8 }
  0x2a   : > { %p1564_p13 = pneg %p1563_p11 }
  0x2c   : > { %p1571_p0 = pnand %p1570_p6, %p1564_p13 }
  0x2e   : > { %1574 = shalt.err (!%p1571_p0)
}
  0x2f   : > { %s2229_s2 = sld [smem:[#allocation19_spill]]  ;;  %s35_s25 = sadd.s32 1, %s1719_s17 }
  0x30   : > { %s38_s28 = sadd.s32 1, %s1723_s18  ;;  %p36_p4 = scmp.ge.s32.totalorder %s35_s25, 2 }
  0x31   : > { %s314_s30 = sand.u32 1, %s1707_s14   ;;  %s1169_s12 = sshll.u32 %s1719_s17, 4 }
  0x32   : > { %s1168_s21 = sshll.u32 %s314_s30, 6  ;;  %s2263_s25 = smov (%p36_p4, %s35_s25), 0 }
  0x33   : > { %2230 = sst [smem:[#allocation18_spill]] %s2263_s25  ;;  %s2265_s28 = smov (!%p36_p4, %s38_s28), %s1723_s18 }
  0x34   : > { %s43_s24 = ssub.s32 %s1719_s17, %s2263_s25  ;;  %p40_p6 = scmp.ge.s32.totalorder %s2265_s28, 2 }
  0x35   : > { %1361 = dma.hbm_to_vmem [thread:$0]  (!%p1359_p5), %s2229_s2, 64, %s286_s22, [#allocation8]  }
  0x36   : > { %s1170_s19 = sshll.u32 %s1723_s18, 5  ;;  %s318_s22 = scalar_lea.vmem [#allocation4], %s1168_s21 }
  0x37   : > { %s327_s2 = sshll.u32 %s318_s22, 4  ;;  %s2267_s28 = smov (%p40_p6, %s2265_s28), 0  ;;  %s1910_s2 = int_to_ptr.vmem [resolvable:$true] %s327_s2 }
  0x38   : > { %s324_s9 = sadd.s32 %s1170_s19, %s1169_s12  ;;  %s42_s27 = ssub.s32 %s1723_s18, %s2267_s28 }
  0x39   : > { %s1171_s8 = sshll.u32 %s324_s9, 6  ;;  %s44_s6 = sor.u32 %s43_s24, %s42_s27 }
  0x3a   : > { %p246_p10 = scmp.eq.s32.totalorder %s42_s27, 0  ;;  %p45_p12 = scmp.eq.s32.totalorder %s44_s6, 0 }
  0x3b   : > { %s326_s7 = scalar_lea.hbm %s2186_s0, %s1171_s8  ;;  %s2231_s21 = sadd.s32 1, %s1695_s11 }
  0x3c   : > { %s1920_s22 = scalar_select %p246_p10, %s1695_s11, %s2231_s21  }
  0x3d   : > { %s2232_s5 = sadd.s32 1, %s1707_s14  ;;  %s315_s19 = scalar_lea.sflag [#allocation5], %s314_s30 }
  0x3e   : > { %s1925_s4 = scalar_select %p45_p12, %s1707_s14, %s2232_s5  }
  0x3f   : > { %p1577_p0 = pneg %p1891_p7  ;;  %s1588_s12 = scalar_lea.vmem %s1910_s2, 1024 }
  0x40   : > { %p1589_p1 = scmp.ne.s32.totalorder %s1910_s2, %s1588_s12  ;;  %s1730_s9 = smov [#allocation4]  }
  0x41   : > { %s1593_s27 = sshll.u32 %s1730_s9, 4  ;;  %s1594_s27 = int_to_ptr.vmem [resolvable:$false] %s1593_s27 }
  0x42   : > { %p1591_p2 = pnand %p1589_p1, %p1577_p0  ;;  %s1595_s6 = scalar_lea.vmem %s1594_s27, 2048 }
  0x43   : > { %p1596_p8 = scmp.lt.s32.totalorder %s1910_s2, %s1594_s27  ;;  %p1597_p9 = scmp.lt.s32.totalorder %s1595_s6, %s1588_s12 }
  0x44   : > { %p1592_p5 = pneg %p1591_p2 }
  0x45   : > { %p1598_p11 = por %p1597_p9, %p1596_p8 }
  0x47   : > { %p1599_p13 = pnand %p1598_p11, %p1592_p5 }
  0x49   : > { %1602 = shalt.err (!%p1599_p13)
}
  0x4a   : > { %s1731_s8 = smov 64   ;;  %s1732_s5 = smov 4  }
  0x4b   : > { %1365 = dma.hbm_to_vmem [thread:$0]  (!%p1891_p7), %s326_s7, 1024, %s1910_s2, %s315_s19, %s1731_s8, %s1731_s8, %s1732_s5  }
  0x4c   : > { %p2233_p4 = scmp.ne.s32.totalorder %s2227_s29, 0 }
  0x4d   : > { %s351_s30 = sand.u32 (!%p2233_p4), 1, %s1703_s13   ;;  %p2234_p6 = scmp.ne.s32.totalorder (!%p2233_p4), %s2222_s26, 0 }
  0x4e   : > { %349 = sbr.rel (%p2233_p4) target bundleno = 1513 (0x5e9), region = 56  ;;  %s1173_s17 = sshll.u32 (!%p2233_p4), %s351_s30, 6 }
  0x4f   : > { %s352_s25 = scalar_lea.sflag (!%p2233_p4), [#allocation5], %s351_s30  ;;  %s1938_s24 = scalar_lea.vmem (!%p2233_p4), [#allocation4], %s1173_s17 }
  0x53   : > { %1674 = dma.done.wait (%p2234_p6), %s352_s25, 1024  }
  0x54   : > { %1676 = vsyncadd (%p2234_p6), %s352_s25, 4294966272 }
  0x55   : > { %1678 = dma.done.wait (%p1851_p3), [#allocation8], 64  }
  0x56   : > { %1680 = vsyncadd (%p1851_p3), [#allocation8], 4294967232  ;;  %s398_s2 = sand.u32 1, %s1691_s10   ;;  %p402_p7 = scmp.lt.s32.totalorder %s1715_s16, 1 }
  0x57   : > { %s1952_s7 = sshll.u32 %s398_s2, 2  ;;  %p404_p10 = scmp.lt.s32.totalorder %s1711_s15, 1 }
  0x58   : > { %s403_s26 = scalar_select %p402_p7, %s1715_s16, 1 }
  0x59   : > { %s405_s29 = scalar_select %p404_p10, %s1711_s15, 1 }
  0x5a   : > { %s1176_s20 = sshll.u32 %s403_s26, 1  ;;  %s400_s9 = scalar_lea.vmem [#allocation9], %s1952_s7 }
  0x5b   : > { %s1957_s21 = sadd.s32 %s1176_s20, %s405_s29  ;;  %p1177_p3 = scmp.ne.s32.totalorder %s1711_s15, 0 }
  0x5c   : > { %s408_s12 = scalar_lea.vmem %s2187_s1, %s1957_s21 }
  0x5d   : > { %413 = sbr.rel (%p1177_p3) target bundleno = 100 (0x64), region = 68 }
  0x62   : > { %vm415_vm0 = vcmask 3072   ;;  %v1733_v0 = vmov 0.0  }
  0x63   : > { %414 = vst [vmem:[#allocation2] sm:$0xf] %v1733_v0  ;;  %416 = vst.msk [vmem:[#allocation3] sm:$0xf] %vm415_vm0, %v1733_v0 }
  0x64 PF: > { %v1472_v1 = vld [vmem:[%s2189_s3 + $0x38] sm:$0xff]   ;;  %v1473_v2 = vld [vmem:[%s2189_s3 + $0x30] sm:$0xff]   ;;  %v1474_v3 = vld [vmem:[%s2189_s3 + $0x28] sm:$0xff]   ;;  %v1734_v17 = vmov 0.0   ;;  %v674_v18 = vlaneseq  ;;  %vm1735_vm1 = vmmov 0   ;;  %vm729_vm3 = vcmask 1043456  }
  0x65   : > { %1262 = vmatprep.subr.bf16.mxu0 %v1472_v1  ;;  %v1475_v4 = vld [vmem:[%s2189_s3 + $0x20] sm:$0xff]   ;;  %v1480_v5 = vld [vmem:[%s1938_s24] sm:$0xff]   ;;  %v1476_v6 = vld [vmem:[%s2189_s3 + $0x18] sm:$0xff]   ;;  %1294 = vmatprep.subr.bf16.mxu1 %v1734_v17  ;;  %vm734_vm5 = vcmask 3072   ;;  %p1199_p12 = scmp.ne.s32.totalorder %s1711_s15, 1 }
  0x66   : > { %1263 = vmatpush3.bf16.msra.mxu0 %v1472_v1  ;;  %1278 = vmatprep.mubr.bf16.mxu0 %v1480_v5  ;;  %v1477_v7 = vld [vmem:[%s2189_s3 + $0x10] sm:$0xff]   ;;  %v1478_v8 = vld [vmem:[%s2189_s3 + $0x8] sm:$0xff]   ;;  %v1479_v9 = vld [vmem:[%s2189_s3] sm:$0xff]   ;;  %v1999_v19 = vshrl.u32 %v674_v18, 7  ;;  %s2236_s29 = sld [smem:[#allocation21_spill]] (!%p1199_p12) }
  0x67   : > { %1264 = vmatprep.subr.bf16.mxu0 %v1473_v2  ;;  %v1481_v10 = vld [vmem:[%s1938_s24 + $0x8] sm:$0xff]   ;;  %v1482_v11 = vld [vmem:[%s1938_s24 + $0x10] sm:$0xff]   ;;  %v1483_v12 = vld [vmem:[%s1938_s24 + $0x18] sm:$0xff]   ;;  %1310 = vmatprep.mubr.msk.bf16.mxu1 %vm1735_vm1, %v1734_v17  ;;  %s2238_s20 = sld [smem:[#allocation22_spill]] (!%p1199_p12) }
  0x68   : > { %v1484_v13 = vld [vmem:[%s1938_s24 + $0x20] sm:$0xff]   ;;  %v1485_v14 = vld [vmem:[%s1938_s24 + $0x28] sm:$0xff]   ;;  %v1486_v15 = vld [vmem:[%s1938_s24 + $0x30] sm:$0xff]   ;;  %s2239_s19 = sld [smem:[#allocation24_spill]] (!%p1199_p12) }
  0x69   : > { %v1487_v16 = vld [vmem:[%s1938_s24 + $0x38] sm:$0xff]   ;;  %s2237_s24 = sld [smem:[#allocation23_spill]] (!%p1199_p12) }
  0x6a   : > { %1265 = vmatpush3.bf16.msra.mxu0 %v1473_v2  ;;  %v2006_v20 = vld [vmem:[%s408_s12] ss:$0 sm:$0xff]  ;;  %s2235_s12 = sld [smem:[#allocation20_spill]] }
  0x6b   : > { %1266 = vmatprep.subr.bf16.mxu0 %v1474_v3  ;;  %vm680_vm2 = vcmp.eq.s32.totalorder %v1999_v19, %v2006_v20 }
  0x6c   : > { %v1196_v21 = vsel %vm680_vm2, 1.0, %v1734_v17  ;;  %vm1197_vm4 = vmpackc.low %vm680_vm2, %vm680_vm2 }
  0x6d   : > { %v730_v22 = vsel %vm729_vm3, %v1196_v21, 0.0  ;;  %v727_v21 = vld [vmem:[#allocation3] sm:$0xf] }
  0x6e   : > { %1267 = vmatpush3.bf16.msra.mxu0 %v1474_v3  ;;  %731 = vadd.xlane.f32.xlu0 %v730_v22 }
  0x6f   : > { %1268 = vmatprep.subr.bf16.mxu0 %v1475_v4 }
  0x70   : > { %v1178_v36 = vld [vmem:[%s2235_s12] ss:$0 sm:$0xff] }
  0x72   : > { %1269 = vmatpush3.bf16.msra.mxu0 %v1475_v4 }
  0x73   : > { %1270 = vmatprep.subr.bf16.mxu0 %v1476_v6 }
  0x76   : > { %1271 = vmatpush3.bf16.msra.mxu0 %v1476_v6 }
  0x77   : > { %1272 = vmatprep.subr.bf16.mxu0 %v1477_v7 }
  0x7a   : > { %1273 = vmatpush3.bf16.msra.mxu0 %v1477_v7 }
  0x7b   : > { %1274 = vmatprep.subr.bf16.mxu0 %v1478_v8 }
  0x7e   : > { %1275 = vmatpush3.bf16.msra.mxu0 %v1478_v8 }
  0x7f   : > { %1276 = vmatprep.subr.bf16.mxu0 %v1479_v9 }
  0x82   : > { %1277 = vmatpush3.bf16.msra.mxu0 %v1479_v9 }
  0x85   : > { %1279 = vmatmul.mubr.bf16.vlgmr.msra.gmra.mxu0 %v1481_v10 }
  0x86   : > { %1282 = vmatprep.mubr.bf16.mxu0 %v1482_v11 }
  0x8d   : > { %1283 = vmatmul.mubr.bf16.gmra.mxu0 %v1483_v12 }
  0x8e   : > { %1286 = vmatprep.mubr.bf16.mxu0 %v1484_v13 }
  0x95   : > { %1287 = vmatmul.mubr.bf16.gmra.mxu0 %v1485_v14 }
  0x96   : > { %1290 = vmatprep.mubr.bf16.mxu0 %v1486_v15 }
  0x9d   : > { %1291 = vmatmul.mubr.bf16.gmra.mxu0 %v1487_v16  ;;  %v1736_v16 = vmov 1.0|1.0  }
  0xf7   : > { %v732_v22 = vpop.xlane.xlu0 %731 }
 0x145   : > { %v1280_v23 = vpop.f32.mrf.mxu0 }
 0x146   : > { %v595_v60 = vadd.f32 %v1280_v23, %v1178_v36  ;;  %v733_v23 = vadd.f32 %v732_v22, %v727_v21 }
 0x147   : > { %v586_v24 = vpop.f32.mrf.mxu0 }
 0x148   : > { %v587_v1 = vadd.f32 %v1178_v36, %v586_v24  ;;  %735 = vst.msk [vmem:[#allocation3] sm:$0xf] %vm734_vm5, %v733_v23  ;;  %v684_v24 = vld [vmem:[#allocation2] sm:$0xf] }
 0x149   : > { %v1281_v25 = vpop.f32.mrf.mxu0 }
 0x14a   : > { %v598_v57 = vadd.f32 %v1281_v25, %v1178_v36 }
 0x14b   : > { %v589_v26 = vpop.f32.mrf.mxu0 }
 0x14c   : > { %v590_v62 = vadd.f32 %v1178_v36, %v589_v26 }
 0x14d   : > { %v1284_v27 = vpop.f32.mrf.mxu0 }
 0x14e   : > { %v611_v50 = vadd.f32 %v1284_v27, %v1178_v36 }
 0x14f   : > { %v602_v28 = vpop.f32.mrf.mxu0 }
 0x150   : > { %v603_v55 = vadd.f32 %v1178_v36, %v602_v28 }
 0x151   : > { %v1285_v29 = vpop.f32.mrf.mxu0 }
 0x152   : > { %v614_v48 = vadd.f32 %v1285_v29, %v1178_v36 }
 0x153   : > { %v605_v30 = vpop.f32.mrf.mxu0 }
 0x154   : > { %v606_v52 = vadd.f32 %v1178_v36, %v605_v30 }
 0x155   : > { %v1288_v31 = vpop.f32.mrf.mxu0 }
 0x156   : > { %v627_v45 = vadd.f32 %v1288_v31, %v1178_v36 }
 0x157   : > { %v618_v32 = vpop.f32.mrf.mxu0 }
 0x158   : > { %v619_v47 = vadd.f32 %v1178_v36, %v618_v32 }
 0x159   : > { %v1289_v33 = vpop.f32.mrf.mxu0 }
 0x15a   : > { %v630_v44 = vadd.f32 %v1289_v33, %v1178_v36 }
 0x15b   : > { %v621_v34 = vpop.f32.mrf.mxu0 }
 0x15c   : > { %v622_v46 = vadd.f32 %v1178_v36, %v621_v34 }
 0x15d   : > { %v1292_v35 = vpop.f32.mrf.mxu0 }
 0x15e   : > { %v643_v37 = vadd.f32 %v1292_v35, %v1178_v36 }
 0x15f   : > { %v634_v38 = vpop.f32.mrf.mxu0 }
 0x160   : > { %1488 = vtanh.f32 %v643_v37  ;;  %v635_v42 = vadd.f32 %v1178_v36, %v634_v38 }
 0x161   : > { %v1293_v39 = vpop.f32.mrf.mxu0 }
 0x162   : > { %v646_v40 = vadd.f32 %v1293_v39, %v1178_v36 }
 0x163   : > { %v637_v41 = vpop.f32.mrf.mxu0 }
 0x164   : > { %1490 = vtanh.f32 %v646_v40  ;;  %v638_v43 = vadd.f32 %v1178_v36, %v637_v41 }
 0x166   : > { %1492 = vtanh.f32 %v638_v43 }
 0x167   : > { %1494 = vtanh.f32 %v635_v42 }
 0x168   : > { %1496 = vtanh.f32 %v630_v44 }
 0x169   : > { %1498 = vtanh.f32 %v627_v45 }
 0x16a   : > { %1500 = vtanh.f32 %v622_v46 }
 0x16b   : > { %1502 = vtanh.f32 %v619_v47 }
 0x16c   : > { %1504 = vtanh.f32 %v614_v48 }
 0x16d   : > { %v1489_v49 = vpop.eup %1488  ;;  %1506 = vtanh.f32 %v611_v50 }
 0x16e   : > { %1508 = vtanh.f32 %v606_v52 }
 0x16f   : > { %1510 = vtanh.f32 %v603_v55 }
 0x170   : > { %1512 = vtanh.f32 %v598_v57 }
 0x171   : > { %v1491_v51 = vpop.eup %1490  ;;  %1514 = vtanh.f32 %v595_v60 }
 0x172   : > { %v672_v53 = vpack.c.bf16 %v1491_v51, %v1489_v49  ;;  %1516 = vtanh.f32 %v590_v62 }
 0x173   : > { %v1493_v54 = vpop.eup %1492  ;;  %1518 = vtanh.f32 %v587_v1 }
 0x174   : > { %1295 = vmatpush3.bf16.msra.mxu1 %v672_v53  ;;  %v1495_v56 = vpop.eup %1494 }
 0x175   : > { %1296 = vmatprep.subr.bf16.mxu1 %v1734_v17  ;;  %v671_v58 = vpack.c.bf16 %v1493_v54, %v1495_v56  ;;  %v1497_v59 = vpop.eup %1496 }
 0x176   : > { %v1499_v61 = vpop.eup %1498 }
 0x177   : > { %v670_v63 = vpack.c.bf16 %v1497_v59, %v1499_v61  ;;  %v1501_v0 = vpop.eup %1500 }
 0x178   : > { %1297 = vmatpush3.bf16.msra.mxu1 %v671_v58  ;;  %v1503_v2 = vpop.eup %1502 }
 0x179   : > { %1298 = vmatprep.subr.bf16.mxu1 %v1734_v17  ;;  %v669_v3 = vpack.c.bf16 %v1501_v0, %v1503_v2  ;;  %v1505_v4 = vpop.eup %1504 }
 0x17a   : > { %v1507_v5 = vpop.eup %1506 }
 0x17b   : > { %v668_v6 = vpack.c.bf16 %v1505_v4, %v1507_v5  ;;  %v1509_v7 = vpop.eup %1508 }
 0x17c   : > { %1299 = vmatpush3.bf16.msra.mxu1 %v670_v63  ;;  %v1511_v8 = vpop.eup %1510 }
 0x17d   : > { %1300 = vmatprep.subr.bf16.mxu1 %v1734_v17  ;;  %v667_v9 = vpack.c.bf16 %v1509_v7, %v1511_v8  ;;  %v1513_v10 = vpop.eup %1512 }
 0x17e   : > { %v1515_v11 = vpop.eup %1514 }
 0x17f   : > { %v666_v12 = vpack.c.bf16 %v1513_v10, %v1515_v11  ;;  %v1517_v13 = vpop.eup %1516 }
 0x180   : > { %1301 = vmatpush3.bf16.msra.mxu1 %v669_v3  ;;  %v1519_v14 = vpop.eup %1518 }
 0x181   : > { %1302 = vmatprep.subr.bf16.mxu1 %v1734_v17  ;;  %v665_v15 = vpack.c.bf16 %v1517_v13, %v1519_v14 }
 0x184   : > { %1303 = vmatpush3.bf16.msra.mxu1 %v668_v6 }
 0x185   : > { %1304 = vmatprep.subr.bf16.mxu1 %v1734_v17 }
 0x188   : > { %1305 = vmatpush3.bf16.msra.mxu1 %v667_v9 }
 0x189   : > { %1306 = vmatprep.subr.bf16.mxu1 %v1734_v17 }
 0x18c   : > { %1307 = vmatpush3.bf16.msra.mxu1 %v666_v12 }
 0x18d   : > { %1308 = vmatprep.subr.bf16.mxu1 %v1734_v17 }
 0x190   : > { %1309 = vmatpush3.bf16.msra.mxu1 %v665_v15 }
 0x193   : > { %1311 = vmatmul.mubr.msk.bf16.vlgmr.msra.gmra.mxu1 %vm1197_vm4, %v1736_v16 }
 0x253   : > { %v719_v25 = vpop.f32.mrf.mxu1 }
 0x254   : > { %v725_v26 = vadd.f32 %v719_v25, %v684_v24 }
 0x255   : > { %v1312_v27 = vpop.f32.mrf.mxu1  ;;  %739 = sbr.rel (%p1199_p12) target bundleno = 1487 (0x5cf), region = 72 }
 0x256   : > { %726 = vst [vmem:[#allocation2] sm:$0xf] %v725_v26 }
 0x257   : > { %v722_v17 = vpop.f32.mrf.mxu1 }
 0x259   : > { %v1313_v28 = vpop.f32.mrf.mxu1 }
 0x25a   : > { %v740_v20 = vld [vmem:[#allocation3] sm:$0xf]  ;;  %v1737_v29 = vmov 0   ;;  %v1738_v31 = vmov 0.0   ;;  %v1521_v32 = vld [vmem:[%s2236_s29 + $0x38] sm:$0xff]   ;;  %v1522_v33 = vld [vmem:[%s2236_s29 + $0x30] sm:$0xff]  }
 0x25b   : > { %1520 = vset.pattern.permute.xlu0 %v1737_v29  ;;  %v741_v30 = vmax.f32 %v740_v20, 1.0  ;;  %1314 = vmatprep.subr.bf16.mxu0 %v1738_v31  ;;  %v1523_v34 = vld [vmem:[%s2236_s29 + $0x28] sm:$0xff]   ;;  %v1524_v35 = vld [vmem:[%s2236_s29 + $0x20] sm:$0xff]   ;;  %v1525_v36 = vld [vmem:[%s2236_s29 + $0x18] sm:$0xff]   ;;  %vm1739_vm6 = vmmov 0   ;;  %vm920_vm7 = vcmask 785408  }
 0x25c   : > { %1334 = vmatprep.subr.bf16.mxu1 %v1738_v31  ;;  %1315 = vmatpush3.bf16.msra.mxu0 %v1521_v32  ;;  %v1529_v38 = vld [vmem:[%s2237_s24 + $0x28] sm:$0xff]   ;;  %v1526_v39 = vld [vmem:[%s2236_s29 + $0x10] sm:$0xff]   ;;  %v1530_v40 = vld [vmem:[%s2237_s24 + $0x20] sm:$0xff]   ;;  %v2077_v59 = vand.u32 127, %v674_v18  ;;  %vm1034_vm15 = vcmp.eq.s32.totalorder %v1999_v19, 0 }
 0x25d   : > { %1535 = vrcp.f32 %v741_v30  ;;  %1316 = vmatprep.subr.bf16.mxu0 %v1738_v31  ;;  %1330 = vmatprep.mubr.msk.bf16.mxu0 %vm1739_vm6, %v1738_v31  ;;  %v1527_v41 = vld [vmem:[%s2236_s29 + $0x8] sm:$0xff]   ;;  %v1531_v42 = vld [vmem:[%s2237_s24 + $0x18] sm:$0xff]   ;;  %v1528_v43 = vld [vmem:[%s2236_s29] sm:$0xff]  }
 0x25e   : > { %1346 = vmatprep.mubr.msk.bf16.mxu1 %vm1739_vm6, %v1738_v31  ;;  %1335 = vmatpush3.bf16.msra.mxu1 %v1529_v38  ;;  %v1532_v44 = vld [vmem:[%s2237_s24 + $0x10] sm:$0xff]   ;;  %v744_v45 = vld [vmem:[#allocation2] sm:$0xf]  ;;  %v1533_v49 = vld [vmem:[%s2237_s24 + $0x8] sm:$0xff]   ;;  %vm989_vm8 = vcmp.ge.s32.totalorder %v2077_v59, 4  ;;  %vm990_vm9 = vcmp.lt.s32.totalorder %v2077_v59, 8 }
 0x25f   : > { %1336 = vmatprep.subr.bf16.mxu1 %v1738_v31  ;;  %v1534_v50 = vld [vmem:[%s2237_s24] sm:$0xff]   ;;  %vm1007_vm10 = vcmp.ge.s32.totalorder %v2077_v59, 8  ;;  %vm1008_vm11 = vcmp.lt.s32.totalorder %v2077_v59, 12  ;;  %vm2086_vm12 = vmand %vm989_vm8, %vm990_vm9  ;;  %vm972_vm13 = vcmp.lt.s32.totalorder %v2077_v59, 4  ;;  %v966_v20 = vld [vmem:[#allocation7] sm:$0xf] }
 0x260   : > { %1317 = vmatpush3.bf16.msra.mxu0 %v1522_v33  ;;  %v1200_v51 = vld [vmem:[%s2238_s20] ss:$0 sm:$0xff]  ;;  %vm2093_vm14 = vmand %vm1007_vm10, %vm1008_vm11  ;;  %vm1035_vm0 = vcmp.eq.s32.totalorder %v2077_v59, 12 }
 0x261   : > { %1318 = vmatprep.subr.bf16.mxu0 %v1738_v31  ;;  %v1209_v60 = vld [vmem:[%s2239_s19] ss:$0 sm:$0xff]  ;;  %vm1036_vm1 = vmand %vm1034_vm15, %vm1035_vm0 }
 0x262   : > { %1337 = vmatpush3.bf16.msra.mxu1 %v1530_v40 }
 0x263   : > { %1338 = vmatprep.subr.bf16.mxu1 %v1738_v31 }
 0x264   : > { %1319 = vmatpush3.bf16.msra.mxu0 %v1523_v34 }
 0x265   : > { %1320 = vmatprep.subr.bf16.mxu0 %v1738_v31 }
 0x266   : > { %1339 = vmatpush3.bf16.msra.mxu1 %v1531_v42 }
 0x267   : > { %1340 = vmatprep.subr.bf16.mxu1 %v1738_v31 }
 0x268   : > { %1321 = vmatpush3.bf16.msra.mxu0 %v1524_v35 }
 0x269   : > { %1322 = vmatprep.subr.bf16.mxu0 %v1738_v31 }
 0x26a   : > { %v1536_v37 = vpop.eup %1535  ;;  %1341 = vmatpush3.bf16.msra.mxu1 %v1532_v44 }
 0x26b   : > { %747 = vperm.xlu0 %1520, %v1536_v37   ;;  %1342 = vmatprep.subr.bf16.mxu1 %v1738_v31 }
 0x26c   : > { %1323 = vmatpush3.bf16.msra.mxu0 %v1525_v36 }
 0x26d   : > { %1324 = vmatprep.subr.bf16.mxu0 %v1738_v31 }
 0x26e   : > { %1343 = vmatpush3.bf16.msra.mxu1 %v1533_v49 }
 0x26f   : > { %1344 = vmatprep.subr.bf16.mxu1 %v1738_v31 }
 0x270   : > { %1325 = vmatpush3.bf16.msra.mxu0 %v1526_v39 }
 0x271   : > { %1326 = vmatprep.subr.bf16.mxu0 %v1738_v31 }
 0x272   : > { %1345 = vmatpush3.bf16.msra.mxu1 %v1534_v50 }
 0x274   : > { %1327 = vmatpush3.bf16.msra.mxu0 %v1527_v41 }
 0x275   : > { %1328 = vmatprep.subr.bf16.mxu0 %v1738_v31 }
 0x278   : > { %1329 = vmatpush3.bf16.msra.mxu0 %v1528_v43 }
 0x2e6   : > { %v748_v46 = vpop.permute.xlu0 %747 }
 0x2e7   : > { %v750_v47 = vmul.f32 %v748_v46, %v744_v45 }
 0x2e9   : > { %v751_v48 = vpack.c.bf16 %v750_v47, %v750_v47 }
 0x2eb   : > { %1331 = vmatmul.mubr.bf16.vlgmr.msra.gmra.mxu0 %v751_v48 }
 0x3ab   : > { %v857_v52 = vpop.f32.mrf.mxu0 }
 0x3ac   : > { %v858_v53 = vadd.f32 %v1200_v51, %v857_v52 }
 0x3ad   : > { %v1332_v54 = vpop.f32.mrf.mxu0 }
 0x3ae   : > { %v863_v55 = vmax.f32 %v858_v53, 0.0 }
 0x3af   : > { %v860_v56 = vpop.f32.mrf.mxu0 }
 0x3b0   : > { %v864_v57 = vpack.c.bf16 %v863_v55, %v863_v55 }
 0x3b1   : > { %v1333_v58 = vpop.f32.mrf.mxu0 }
 0x3b2   : > { %1347 = vmatmul.mubr.msk.bf16.vlgmr.msra.gmra.mxu1 %vm920_vm7, %v864_v57 }
 0x472   : > { %v958_v61 = vpop.f32.mrf.mxu1 }
 0x473   : > { %v2091_v18 = vadd.f32 %v1209_v60, %v958_v61 }
 0x474   : > { %v1348_v63 = vpop.f32.mrf.mxu1 }
 0x475   : > { %v992_v1 = vsel %vm2086_vm12, %v2091_v18, -1e+30  ;;  %v974_v2 = vsel %vm972_vm13, %v2091_v18, -1e+30  ;;  %v1010_v6 = vsel %vm2093_vm14, %v2091_v18, -1e+30  ;;  %v967_v30 = vmul.f32 %v966_v20, %v2091_v18 }
 0x476   : > { %v961_v3 = vpop.f32.mrf.mxu1  ;;  %v993_v4 = vsel %vm729_vm3, %v992_v1, -inf  ;;  %v975_v5 = vsel %vm729_vm3, %v974_v2, -inf  ;;  %v1011_v8 = vsel %vm729_vm3, %v1010_v6, -inf }
 0x477   : > { %994 = vmax.xlane.f32.xlu1 %v993_v4  ;;  %976 = vmax.xlane.f32.xlu0 %v975_v5  ;;  %v968_v31 = vsel %vm729_vm3, %v967_v30, 0.0 }
 0x478   : > { %v1349_v7 = vpop.f32.mrf.mxu1 }
 0x47b   : > { %1012 = vmax.xlane.f32.xlu1 %v1011_v8 }
 0x500   : > { %v995_v9 = vpop.xlane.xlu1 %994  ;;  %v977_v10 = vpop.xlane.xlu0 %976 }
 0x501   : > { %v996_v11 = vsub.f32 %v2091_v18, %v995_v9  ;;  %v978_v12 = vsub.f32 %v2091_v18, %v977_v10 }
 0x503   : > { %v997_v13 = vmul.f32 1.442695, %v996_v11  ;;  %v979_v14 = vmul.f32 1.442695, %v978_v12 }
 0x504   : > { %v1013_v15 = vpop.xlane.xlu1 %1012 }
 0x505   : > { %1537 = vpow2.f32 %v997_v13  ;;  %v1014_v16 = vsub.f32 %v2091_v18, %v1013_v15 }
 0x506   : > { %1539 = vpow2.f32 %v979_v14 }
 0x507   : > { %v1015_v21 = vmul.f32 1.442695, %v1014_v16 }
 0x509   : > { %1541 = vpow2.f32 %v1015_v21 }
 0x512   : > { %v1538_v22 = vpop.eup %1537 }
 0x513   : > { %v1540_v23 = vpop.eup %1539  ;;  %v999_v26 = vsel %vm2086_vm12, %v1538_v22, 0.0 }
 0x514   : > { %v981_v24 = vsel %vm972_vm13, %v1540_v23, 0.0  ;;  %v1000_v17 = vsel %vm729_vm3, %v999_v26, 0.0 }
 0x515   : > { %v982_v25 = vsel %vm729_vm3, %v981_v24, 0.0 }
 0x516   : > { %983 = vadd.xlane.f32.xlu1 %v982_v25  ;;  %v1542_v27 = vpop.eup %1541 }
 0x517   : > { %v1017_v28 = vsel %vm2093_vm14, %v1542_v27, 0.0 }
 0x518   : > { %v1018_v29 = vsel %vm729_vm3, %v1017_v28, 0.0 }
 0x51a   : > { %1001 = vadd.xlane.f32.xlu1 %v1000_v17 }
 0x51e   : > { %1019 = vadd.xlane.f32.xlu1 %v1018_v29 }
 0x522   : > { %969 = vadd.xlane.f32.xlu1 %v968_v31 }
 0x59f   : > { %v984_v32 = vpop.xlane.xlu1 %983 }
 0x5a0   : > { %1543 = vlog2.f32 %v984_v32 }
 0x5a3   : > { %v1002_v33 = vpop.xlane.xlu1 %1001 }
 0x5a4   : > { %1545 = vlog2.f32 %v1002_v33 }
 0x5a7   : > { %v1020_v34 = vpop.xlane.xlu1 %1019 }
 0x5a8   : > { %1547 = vlog2.f32 %v1020_v34 }
 0x5ab   : > { %v970_v46 = vpop.xlane.xlu1 %969 }
 0x5ad   : > { %v1544_v35 = vpop.eup %1543 }
 0x5ae   : > { %v987_v36 = vmul.f32 0.6931472, %v1544_v35 }
 0x5b0   : > { %v988_v37 = vadd.f32 %v987_v36, %v977_v10 }
 0x5b1   : > { %v1546_v38 = vpop.eup %1545 }
 0x5b2   : > { %v1003_v39 = vadd.f32 %v995_v9, %v988_v37  ;;  %v1005_v40 = vmul.f32 0.6931472, %v1546_v38 }
 0x5b4   : > { %v1006_v41 = vadd.f32 %v1005_v40, %v1003_v39 }
 0x5b5   : > { %v1548_v42 = vpop.eup %1547 }
 0x5b6   : > { %v1023_v43 = vmul.f32 0.6931472, %v1548_v42  ;;  %v1021_v44 = vadd.f32 %v1013_v15, %v1006_v41 }
 0x5b8   : > { %v1024_v45 = vadd.f32 %v1023_v43, %v1021_v44 }
 0x5ba   : > { %v1025_v47 = vsub.f32 %v1024_v45, %v970_v46 }
 0x5bc   : > { %v1026_v48 = vsel %vm729_vm3, %v1025_v47, 0.0 }
 0x5bd   : > { %v1027_v49 = vrot.slane %v1026_v48, 4 }
 0x5bf   : > { %v1028_v50 = vadd.f32 %v1027_v49, %v1026_v48 }
 0x5c1   : > { %v1029_v51 = vrot.slane %v1028_v50, 2 }
 0x5c3   : > { %v1030_v52 = vadd.f32 %v1029_v51, %v1028_v50 }
 0x5c5   : > { %v1031_v53 = vrot.slane %v1030_v52, 1 }
 0x5c7   : > { %v1032_v54 = vadd.f32 %v1031_v53, %v1030_v52 }
 0x5c9   : > { %v1033_v55 = vmul.f32 0.25, %v1032_v54 }
 0x5cb   : > { %v1037_v56 = vsel %vm1036_vm1, %v1033_v55, 0.0 }
 0x5cc   : > { %v1038_v57 = vadd.f32 %v1037_v56, %v2091_v18 }
 0x5ce   : > { %1039 = vst [vmem:[%s400_s9] sm:$0xf] %v1038_v57 }
 0x5cf PF: > { %s2244_s27 = sld [smem:[#allocation16_spill]]  ;;  %s1218_s6 = sshll.u32 %s1715_s16, 6 }
 0x5d0   : > { %s2245_s30 = sld [smem:[#allocation25_spill]]  ;;  %s1054_s12 = sshll.u32 %s400_s9, 4  ;;  %s1055_s12 = int_to_ptr.vmem [resolvable:$true] %s1054_s12 }
 0x5d1   : > { %s1041_s25 = scalar_lea.sflag [#allocation6], %s398_s2  ;;  %s1603_s26 = scalar_lea.vmem %s1055_s12, 64 }
 0x5d2   : > { %p1604_p0 = scmp.ne.s32.totalorder %s1055_s12, %s1603_s26  ;;  %s1740_s20 = smov [#allocation9]  }
 0x5d3   : > { %s1607_s23 = sshll.u32 %s1740_s20, 4  ;;  %s1608_s23 = int_to_ptr.vmem [resolvable:$false] %s1607_s23 }
 0x5d4   : > { %s1609_s15 = scalar_lea.vmem %s1608_s23, 128  ;;  %p1610_p8 = scmp.lt.s32.totalorder %s1055_s12, %s1608_s23 }
 0x5d5   : > { %p2247_p1 = scmp.ne.s32.totalorder %s2244_s27, 0  ;;  %p1611_p9 = scmp.lt.s32.totalorder %s1609_s15, %s1603_s26 }
 0x5d6   : > { %s2246_s21 = smov %s2245_s30  ;;  %s1052_s17 = scalar_lea.hbm %s2245_s30, %s1218_s6 }
 0x5d7   : > { %p1605_p2 = pnand %p1604_p0, %p2247_p1  ;;  %p1612_p11 = por %p1611_p9, %p1610_p8 }
 0x5d9   : > { %p1606_p5 = pneg %p1605_p2 }
 0x5db   : > { %p1613_p13 = pnand %p1612_p11, %p1606_p5 }
 0x5dd   : > { %1616 = shalt.err (!%p1613_p13)
}
 0x5de   : > { %s1617_s16 = scalar_lea.hbm %s1052_s17, 64  ;;  %s1621_s9 = scalar_lea.hbm %s2246_s21, 128 }
 0x5df   : > { %p1618_p4 = scmp.ne.s32.totalorder %s1052_s17, %s1617_s16  ;;  %p1622_p10 = scmp.lt.s32.totalorder %s1052_s17, %s2246_s21 }
 0x5e0   : > { %p1623_p3 = scmp.lt.s32.totalorder %s1621_s9, %s1617_s16 }
 0x5e1   : > { %p1619_p6 = pnand %p1618_p4, %p2247_p1 }
 0x5e2   : > { %p1624_p12 = por %p1623_p3, %p1622_p10 }
 0x5e3   : > { %p1620_p7 = pneg %p1619_p6 }
 0x5e5   : > { %p1625_p0 = pnand %p1624_p12, %p1620_p7 }
 0x5e7   : > { %1628 = shalt.err (!%p1625_p0)
}
 0x5e8   : > { %1356 = dma.vmem_to_hbm [thread:$0]  (%p2247_p1), %s1055_s12, 64, %s1052_s17, %s1041_s25  }
 0x5e9 PF: > { %s2248_s8 = sld [smem:[#allocation15_spill]] }
 0x5ea   : > { %s2249_s5 = sld [smem:[#allocation13_spill]] }
 0x5eb   : > { %s2250_s30 = sld [smem:[#allocation17_spill]] }
 0x5ef   : > { %p1373_p2 = scmp.ge.s32.totalorder %s2248_s8, 2 }
 0x5f0   : > { %s1066_s26 = sand.u32 1, %s2249_s5  }
 0x5f1   : > { %p2251_p5 = scmp.ne.s32.totalorder %s2250_s30, 0  ;;  %s1067_s20 = scalar_lea.sflag [#allocation6], %s1066_s26 }
 0x5f3   : > { %p1367_p8 = pnand %p1373_p2, %p2251_p5 }
 0x5f5   : > { %p1368_p9 = pneg %p1367_p8 }
 0x5f7   : > { %1682 = dma.done.wait (%p1368_p9), %s1067_s20, 64  }
 0x5f8   : > { %1684 = vsyncadd (%p1368_p9), %s1067_s20, 4294967232  ;;  %s26_s19 = sadd.s32 1, %s2248_s8   ;;  %s2252_s15 = sld [smem:[#allocation14_spill]] }
 0x5f9   : > { %p23_p11 = scmp.ge.s32.totalorder %s26_s19, 6   ;;  %s2253_s17 = sld [smem:[#allocation18_spill]] }
 0x5fa   : > { %s2254_s30 = smov %s1691_s10  ;;  %s2255_s10 = smov %s1695_s11 }
 0x5fb   : > { %s2256_s11 = smov %s1920_s22  ;;  %s2257_s12 = smov %s1703_s13 }
 0x5fc   : > { %s2258_s13 = smov %s1707_s14  ;;  %s2259_s14 = smov %s1925_s4 }
 0x5fd   : > { %s2260_s16 = smov %s1723_s18  ;;  %s2261_s18 = smov %s2267_s28 }
 0x5fe   :  { %25 = sbr.rel (!%p23_p11) target bundleno = 18 (0x12), region = 116 }
 0x603   :  { %1072 = vsyncpa [#allocation5], 1 }
 0x604   :  { %1074 = vsyncpa [#allocation5 + $0x1], 1 }
 0x605   :  { %1075 = vsyncpa [#allocation8], 1 }
 0x606   :  { %1076 = vsyncpa [#allocation6], 1 }
 0x607   :  { %1078 = vsyncpa [#allocation6 + $0x1], 1 }

</bundles_post_ra>
